<compile_context>
chip_gen: v7x
topology: tpu7x:2x2x1
jax: 0.10.0
libtpu: 0.0.40
codegen_flags: <defaults>
</compile_context>

<pallas_src>
import functools

import jax
import jax.numpy as jnp
from jax import lax
from jax.experimental import pallas as pl
from jax.experimental.pallas import tpu as pltpu


def _round_up(x, m):
    return ((x + m - 1) // m) * m


def _partial_sums(p_ref, t_ref, *, bc_block, n_chunks, valid_cols=None):
    """Lane-wise partial sums over the first n_chunks*128 columns of the tile.

    Returns (inter, union) of shape (bc_block, 128), float32:
      inter = sum_j p*t,  union = sum_j (p*p + t)
    optionally masking columns >= valid_cols (column index within this tile).
    Accumulation is carried in SSA values (vregs), not VMEM.
    """
    zeros = jnp.zeros((bc_block, 128), jnp.float32)
    if valid_cols is not None:
        lane = lax.broadcasted_iota(jnp.int32, (bc_block, 128), 1)

    def step(col_off, pi, ui):
        p = p_ref[:, pl.ds(col_off, 128)].astype(jnp.float32)
        t = t_ref[:, pl.ds(col_off, 128)].astype(jnp.float32)
        if valid_cols is not None:
            m = (lane + col_off) < valid_cols
            p = jnp.where(m, p, 0.0)
            t = jnp.where(m, t, 0.0)
        return pi + p * t, ui + (p * p + t)

    if n_chunks <= 16:
        # Small tiles: fully static unrolled loop.
        pi, ui = zeros, zeros
        for j in range(n_chunks):
            pi, ui = step(j * 128, pi, ui)
        return pi, ui

    # Large tiles: partially unrolled fori_loop keeps code size and vreg
    # live ranges bounded while retaining LLO scheduling visibility.
    def body(j, carry):
        off = pl.multiple_of(j * 128, 128)
        return step(off, *carry)

    return lax.fori_loop(0, n_chunks, body, (zeros, zeros), unroll=8)


def _dice_sums_kernel(p_ref, t_ref, inter_out, union_out, inter_acc, union_acc,
                      *, bc_block, lane_chunks, num_k, num_k_inner,
                      tail_cols, tail_chunks, needs_valid_guard):
    """One grid step of the (split, row_block, spatial) grid.

    p_ref, t_ref : (bc_block, tile_s) VMEM tiles (native dtype)
    inter_out    : (1, bc_block, 1) f32 partial intersection (per split/row block)
    union_out    : (1, bc_block, 1) f32 partial union        (per split/row block)
    inter_acc, union_acc : (bc_block, 128) f32 lane-wise running sums (scratch)
    """
    s = pl.program_id(0)          # spatial split index (parallel)
    k = pl.program_id(2)          # reduction step within this split

    @pl.when(k == 0)
    def _init():
        inter_acc[...] = jnp.zeros_like(inter_acc)
        union_acc[...] = jnp.zeros_like(union_acc)

    g = s * num_k_inner + k       # global spatial block index

    def accumulate(n_chunks, valid_cols):
        pi, ui = _partial_sums(p_ref, t_ref, bc_block=bc_block,
                               n_chunks=n_chunks, valid_cols=valid_cols)
        # Single scratch read-modify-write per grid step (hoisted accumulators).
        inter_acc[...] += pi
        union_acc[...] += ui

    if tail_cols is not None:
        if num_k > 1:
            @pl.when(g < num_k - 1)
            def _full():
                accumulate(lane_chunks, None)

        @pl.when(g == num_k - 1)
        def _tail():
            accumulate(tail_chunks, tail_cols)
    elif needs_valid_guard:
        @pl.when(g < num_k)
        def _guarded():
            accumulate(lane_chunks, None)
    else:
        accumulate(lane_chunks, None)

    @pl.when(k == num_k_inner - 1)
    def _finalize():
        inter_out[0] = jnp.sum(inter_acc[...], axis=1, keepdims=True)
        union_out[0] = jnp.sum(union_acc[...], axis=1, keepdims=True)


def dice_score(predict, target, smooth=1e-6):
    """Per-(batch, channel) dice coefficient, matching DiceScore.forward.

    predict, target: (B, C, ...) arrays (any float dtype, same shape).
    Returns: (B, C) float32 dice coefficients.
    """
    assert predict.shape == target.shape
    B, C = predict.shape[0], predict.shape[1]
    BC = B * C
    S = 1
    for d in predict.shape[2:]:
        S *= d

    # Glue: flatten spatial dims only; no padding (tails handled in-kernel).
    p2 = predict.reshape(BC, S)
    t2 = target.reshape(BC, S)

    isz_p = jnp.dtype(p2.dtype).itemsize
    isz_t = jnp.dtype(t2.dtype).itemsize

    # Row (B*C) block: full-dim block when small (always legal, no garbage
    # rows); otherwise a 64-row block (multiple of every sublane tile, keeps
    # hoisted accumulators well under vreg pressure).
    bc_block = BC if BC <= 64 else 64
    num_r = pl.cdiv(BC, bc_block)
    rows_pad = _round_up(bc_block, 16)   # conservative sublane-padding estimate

    # Spatial tile: as large as a generation-aware VMEM budget allows, so the
    # ~0.35us per-step overhead amortizes away.
    try:
        vmem_cap = int(pltpu.get_tpu_info().vmem_capacity_bytes)
    except Exception:
        vmem_cap = 64 * 1024 * 1024      # conservative (v7x-sized) fallback
    budget = max(4 * 1024 * 1024, min(vmem_cap // 3, 24 * 1024 * 1024))

    tile_s = budget // (2 * rows_pad * (isz_p + isz_t))   # 2x = double buffering
    tile_s = max(128, (tile_s // 128) * 128)
    tile_s = min(tile_s, _round_up(S, 128))

    num_k = pl.cdiv(S, tile_s)
    lane_chunks = tile_s // 128

    # Split the spatial reduction over a second 'parallel' axis when the row
    # axis alone cannot feed two TensorCores (v7x); harmless on 1-TC chips.
    n_split = 2 if (num_r == 1 and num_k >= 8) else 1
    num_k_inner = pl.cdiv(num_k, n_split)
    needs_valid_guard = (n_split * num_k_inner) != num_k

    tail = S - (num_k - 1) * tile_s
    tail_cols = None if tail == tile_s else tail
    tail_chunks = 0 if tail_cols is None else pl.cdiv(tail_cols, 128)

    kernel = functools.partial(
        _dice_sums_kernel, bc_block=bc_block, lane_chunks=lane_chunks,
        num_k=num_k, num_k_inner=num_k_inner, tail_cols=tail_cols,
        tail_chunks=tail_chunks, needs_valid_guard=needs_valid_guard)

    out_rows = n_split * num_r
    out_shape = (jax.ShapeDtypeStruct((out_rows, bc_block, 1), jnp.float32),
                 jax.ShapeDtypeStruct((out_rows, bc_block, 1), jnp.float32))

    def in_map(s, r, k):
        # Clamp keeps the DMA in bounds for the (rare) over-hanging split
        # blocks; the kernel skips their accumulation via pl.when.
        return (r, jnp.minimum(s * num_k_inner + k, num_k - 1))

    def out_map(s, r, k):
        return (s * num_r + r, 0, 0)

    # Explicit VMEM limit from the actual footprint:
    # 2 inputs x 2 pipeline buffers + 2 f32 lane-accumulators + tiny outputs.
    footprint = (2 * rows_pad * tile_s * (isz_p + isz_t)
                 + 2 * rows_pad * 128 * 4
                 + 4 * rows_pad * 128 * 4)
    vmem_limit = int(min(max(footprint + 4 * 1024 * 1024, 16 * 1024 * 1024),
                         vmem_cap - 2 * 1024 * 1024))

    cost = pl.CostEstimate(
        flops=5 * BC * S, transcendentals=0,
        bytes_accessed=int(BC * S * (isz_p + isz_t) + 2 * out_rows * bc_block * 4))

    inter_p, union_p = pl.pallas_call(
        kernel,
        out_shape=out_shape,
        grid_spec=pltpu.PrefetchScalarGridSpec(
            num_scalar_prefetch=0,
            grid=(n_split, num_r, num_k_inner),
            in_specs=[
                pl.BlockSpec((bc_block, tile_s), in_map),
                pl.BlockSpec((bc_block, tile_s), in_map),
            ],
            out_specs=[
                pl.BlockSpec((1, bc_block, 1), out_map),
                pl.BlockSpec((1, bc_block, 1), out_map),
            ],
            scratch_shapes=[
                pltpu.VMEM((bc_block, 128), jnp.float32),
                pltpu.VMEM((bc_block, 128), jnp.float32),
            ],
        ),
        compiler_params=pltpu.CompilerParams(
            dimension_semantics=("parallel", "parallel", "arbitrary"),
            vmem_limit_bytes=vmem_limit,
        ),
        cost_estimate=cost,
    )(p2, t2)

    # Tiny JAX epilogue: combine split partials, keep valid rows, divide.
    inter = inter_p[..., 0].reshape(n_split, num_r * bc_block).sum(axis=0)[:BC]
    union = union_p[..., 0].reshape(n_split, num_r * bc_block).sum(axis=0)[:BC]
    dice = (2.0 * inter + smooth) / (union + smooth)
    return dice.reshape(B, C)


class DiceScore:
    """Thin stateful wrapper mirroring punkd DiceScore (score buffer is
    host-side bookkeeping, kept outside the kernel)."""

    def __init__(self, smooth=1e-6):
        self.smooth = smooth
        self.score = None

    def __call__(self, predict, target):
        d = dice_score(predict, target, self.smooth)
        self.score = d if self.score is None else jnp.concatenate(
            (self.score, d), axis=0)
        return d

    def aggregate(self):
        return jnp.mean(self.score, axis=0)

    def reset(self):
        self.score = None


def dice_score_ref(predict, target, smooth=1e-6):
    """Pure-JAX reference mirroring DiceLoss.calculate_dice(reduction='channel')."""
    B, C = predict.shape[0], predict.shape[1]
    p = predict.reshape(B, C, -1).astype(jnp.float32)
    t = target.reshape(B, C, -1).astype(jnp.float32)
    inter = jnp.sum(p * t, axis=2)
    union = jnp.sum(p * p, axis=2) + jnp.sum(t, axis=2)
    return (2.0 * inter + smooth) / (union + smooth)


if __name__ == "__main__":
    key = jax.random.PRNGKey(0)
    k1, k2, k3, k4 = jax.random.split(key, 4)

    # Case 1: small NCHW f32; spatial size is a clean multiple of 128.
    B, C, H, W = 2, 4, 16, 16
    predict = jax.nn.sigmoid(jax.random.normal(k1, (B, C, H, W), dtype=jnp.float32))
    target = (jax.random.uniform(k2, (B, C, H, W)) > 0.5).astype(jnp.float32)
    out = jax.block_until_ready(dice_score(predict, target))
    ref = dice_score_ref(predict, target)
    assert out.shape == (B, C)
    assert jnp.allclose(out, ref, atol=1e-5, rtol=1e-5), (out, ref)

    # Case 2: odd shapes -> exercises the in-kernel ragged-tail masking and a
    # full-dim (non multiple-of-8) row block, with no host-side padding.
    B2, C2, H2, W2 = 1, 3, 7, 9
    predict2 = jax.nn.sigmoid(jax.random.normal(k3, (B2, C2, H2, W2), dtype=jnp.float32))
    target2 = (jax.random.uniform(k4, (B2, C2, H2, W2)) > 0.5).astype(jnp.float32)
    out2 = jax.block_until_ready(dice_score(predict2, target2))
    ref2 = dice_score_ref(predict2, target2)
    assert out2.shape == (B2, C2)
    assert jnp.allclose(out2, ref2, atol=1e-5, rtol=1e-5), (out2, ref2)

    # Case 3: bf16 inputs, larger spatial extent -> exercises native-dtype
    # streaming with f32 accumulation and the fori_loop chunk path.
    B3, C3, H3, W3 = 2, 4, 64, 64
    predict3 = jax.nn.sigmoid(
        jax.random.normal(k1, (B3, C3, H3, W3), dtype=jnp.float32)).astype(jnp.bfloat16)
    target3 = (jax.random.uniform(k2, (B3, C3, H3, W3)) > 0.5).astype(jnp.bfloat16)
    out3 = jax.block_until_ready(dice_score(predict3, target3))
    ref3 = dice_score_ref(predict3, target3)
    assert out3.shape == (B3, C3)
    assert jnp.allclose(out3, ref3, atol=1e-3, rtol=1e-3), (out3, ref3)

    # TODO(synk): DiceScore.score accumulation across calls (torch.cat) stays
    # host-side in the DiceScore class above; the kernel reproduces the
    # returned dice_coef exactly.
    print("KERNEL_OK")
</pallas_src>

<mosaic_0001>
module attributes {stable_mosaic.version = 11 : i64} {
  func.func @_dice_sums_kernel(%arg0: i32, %arg1: i32, %arg2: i32, %arg3: memref<8x256xf32, #tpu.memory_space<vmem>>, %arg4: memref<8x256xf32, #tpu.memory_space<vmem>>, %arg5: memref<1x8x1xf32, #tpu.memory_space<vmem>>, %arg6: memref<1x8x1xf32, #tpu.memory_space<vmem>>, %arg7: memref<8x128xf32, #tpu.memory_space<vmem>>, %arg8: memref<8x128xf32, #tpu.memory_space<vmem>>) attributes {dimension_semantics = [#tpu.dimension_semantics<parallel>, #tpu.dimension_semantics<parallel>, #tpu.dimension_semantics<arbitrary>], iteration_bounds = array<i64: 1, 1, 1>, scalar_prefetch = 0 : i64, scratch_operands = 2 : i64, tpu.core_type = #tpu.core_type<tc>, window_params = [{transform_indices = @transform_0, window_bounds = array<i64: 8, 256>}, {transform_indices = @transform_1, window_bounds = array<i64: 8, 256>}, {transform_indices = @transform_2, window_bounds = array<i64: 1, 8, 1>}, {transform_indices = @transform_3, window_bounds = array<i64: 1, 8, 1>}]} {
    %c0_i32 = arith.constant 0 : i32
    %0 = arith.cmpi eq, %arg2, %c0_i32 : i32
    %1 = arith.extui %0 : i1 to i32
    %c0_i32_0 = arith.constant 0 : i32
    %2 = arith.cmpi ne, %1, %c0_i32_0 : i32
    scf.if %2 {
      %cst_17 = arith.constant 0.000000e+00 : f32
      %27 = vector.broadcast %cst_17 : f32 to vector<8x128xf32>
      %c0_18 = arith.constant 0 : index
      %c0_19 = arith.constant 0 : index
      %28 = vector.load %arg7[%c0_18, %c0_19] : memref<8x128xf32, #tpu.memory_space<vmem>>, vector<8x128xf32>
      tpu.vector_store %arg7[%c0_18, %c0_19], %27 {strides = array<i32>} : memref<8x128xf32, #tpu.memory_space<vmem>>, vector<8x128xf32>,
      %cst_20 = arith.constant 0.000000e+00 : f32
      %29 = vector.broadcast %cst_20 : f32 to vector<8x128xf32>
      %c0_21 = arith.constant 0 : index
      %c0_22 = arith.constant 0 : index
      %30 = vector.load %arg8[%c0_21, %c0_22] : memref<8x128xf32, #tpu.memory_space<vmem>>, vector<8x128xf32>
      tpu.vector_store %arg8[%c0_21, %c0_22], %29 {strides = array<i32>} : memref<8x128xf32, #tpu.memory_space<vmem>>, vector<8x128xf32>,
    } else {
    }
    %cst = arith.constant 0.000000e+00 : f32
    %3 = vector.broadcast %cst : f32 to vector<8x128xf32>
    %c0 = arith.constant 0 : index
    %c0_1 = arith.constant 0 : index
    %4 = vector.load %arg3[%c0, %c0_1] : memref<8x256xf32, #tpu.memory_space<vmem>>, vector<8x128xf32>
    %c0_2 = arith.constant 0 : index
    %c0_3 = arith.constant 0 : index
    %5 = vector.load %arg4[%c0_2, %c0_3] : memref<8x256xf32, #tpu.memory_space<vmem>>, vector<8x128xf32>
    %6 = arith.mulf %4, %5 : vector<8x128xf32>
    %7 = arith.addf %3, %6 : vector<8x128xf32>
    %8 = arith.mulf %4, %4 : vector<8x128xf32>
    %9 = arith.addf %8, %5 : vector<8x128xf32>
    %10 = arith.addf %3, %9 : vector<8x128xf32>
    %c0_4 = arith.constant 0 : index
    %c128 = arith.constant 128 : index
    %11 = vector.load %arg3[%c0_4, %c128] : memref<8x256xf32, #tpu.memory_space<vmem>>, vector<8x128xf32>
    %c0_5 = arith.constant 0 : index
    %c128_6 = arith.constant 128 : index
    %12 = vector.load %arg4[%c0_5, %c128_6] : memref<8x256xf32, #tpu.memory_space<vmem>>, vector<8x128xf32>
    %13 = arith.mulf %11, %12 : vector<8x128xf32>
    %14 = arith.addf %7, %13 : vector<8x128xf32>
    %15 = arith.mulf %11, %11 : vector<8x128xf32>
    %16 = arith.addf %15, %12 : vector<8x128xf32>
    %17 = arith.addf %10, %16 : vector<8x128xf32>
    %c0_7 = arith.constant 0 : index
    %c0_8 = arith.constant 0 : index
    %18 = vector.load %arg7[%c0_7, %c0_8] : memref<8x128xf32, #tpu.memory_space<vmem>>, vector<8x128xf32>
    %19 = arith.addf %18, %14 : vector<8x128xf32>
    %c0_9 = arith.constant 0 : index
    %c0_10 = arith.constant 0 : index
    %20 = vector.load %arg7[%c0_9, %c0_10] : memref<8x128xf32, #tpu.memory_space<vmem>>, vector<8x128xf32>
    tpu.vector_store %arg7[%c0_9, %c0_10], %19 {strides = array<i32>} : memref<8x128xf32, #tpu.memory_space<vmem>>, vector<8x128xf32>,
    %c0_11 = arith.constant 0 : index
    %c0_12 = arith.constant 0 : index
    %21 = vector.load %arg8[%c0_11, %c0_12] : memref<8x128xf32, #tpu.memory_space<vmem>>, vector<8x128xf32>
    %22 = arith.addf %21, %17 : vector<8x128xf32>
    %c0_13 = arith.constant 0 : index
    %c0_14 = arith.constant 0 : index
    %23 = vector.load %arg8[%c0_13, %c0_14] : memref<8x128xf32, #tpu.memory_space<vmem>>, vector<8x128xf32>
    tpu.vector_store %arg8[%c0_13, %c0_14], %22 {strides = array<i32>} : memref<8x128xf32, #tpu.memory_space<vmem>>, vector<8x128xf32>,
    %c0_i32_15 = arith.constant 0 : i32
    %24 = arith.cmpi eq, %arg2, %c0_i32_15 : i32
    %25 = arith.extui %24 : i1 to i32
    %c0_i32_16 = arith.constant 0 : i32
    %26 = arith.cmpi ne, %25, %c0_i32_16 : i32
    scf.if %26 {
      %c0_17 = arith.constant 0 : index
      %c0_18 = arith.constant 0 : index
      %27 = vector.load %arg7[%c0_17, %c0_18] : memref<8x128xf32, #tpu.memory_space<vmem>>, vector<8x128xf32>
      %cst_19 = arith.constant dense<0.000000e+00> : vector<8xf32>
      %28 = vector.multi_reduction <add>, %27, %cst_19 [1] : vector<8x128xf32> to vector<8xf32>
      %29 = vector.shape_cast %28 : vector<8xf32> to vector<8x1xf32>
      %c0_20 = arith.constant 0 : index
      %c0_21 = arith.constant 0 : index
      %c0_22 = arith.constant 0 : index
      %30 = vector.load %arg5[%c0_20, %c0_21, %c0_22] : memref<1x8x1xf32, #tpu.memory_space<vmem>>, vector<1x8x1xf32>
      %31 = vector.shape_cast %30 : vector<1x8x1xf32> to vector<8x1xf32>
      %32 = vector.shape_cast %29 : vector<8x1xf32> to vector<1x8x1xf32>
      tpu.vector_store %arg5[%c0_20, %c0_21, %c0_22], %32 {strides = array<i32>} : memref<1x8x1xf32, #tpu.memory_space<vmem>>, vector<1x8x1xf32>,
      %c0_23 = arith.constant 0 : index
      %c0_24 = arith.constant 0 : index
      %33 = vector.load %arg8[%c0_23, %c0_24] : memref<8x128xf32, #tpu.memory_space<vmem>>, vector<8x128xf32>
      %cst_25 = arith.constant dense<0.000000e+00> : vector<8xf32>
      %34 = vector.multi_reduction <add>, %33, %cst_25 [1] : vector<8x128xf32> to vector<8xf32>
      %35 = vector.shape_cast %34 : vector<8xf32> to vector<8x1xf32>
      %c0_26 = arith.constant 0 : index
      %c0_27 = arith.constant 0 : index
      %c0_28 = arith.constant 0 : index
      %36 = vector.load %arg6[%c0_26, %c0_27, %c0_28] : memref<1x8x1xf32, #tpu.memory_space<vmem>>, vector<1x8x1xf32>
      %37 = vector.shape_cast %36 : vector<1x8x1xf32> to vector<8x1xf32>
      %38 = vector.shape_cast %35 : vector<8x1xf32> to vector<1x8x1xf32>
      tpu.vector_store %arg6[%c0_26, %c0_27, %c0_28], %38 {strides = array<i32>} : memref<1x8x1xf32, #tpu.memory_space<vmem>>, vector<1x8x1xf32>,
    } else {
    }
    return
  }
  func.func @transform_0(%arg0: i32, %arg1: i32, %arg2: i32) -> (i32, i32) {
    %c1_i32 = arith.constant 1 : i32
    %0 = arith.muli %arg0, %c1_i32 : i32
    %1 = arith.addi %0, %arg2 : i32
    %c0_i32 = arith.constant 0 : i32
    %2 = arith.minsi %1, %c0_i32 : i32
    %c0_i32_0 = arith.constant 0 : i32
    return %arg1, %2 : i32, i32
  }
  func.func @transform_1(%arg0: i32, %arg1: i32, %arg2: i32) -> (i32, i32) {
    %c1_i32 = arith.constant 1 : i32
    %0 = arith.muli %arg0, %c1_i32 : i32
    %1 = arith.addi %0, %arg2 : i32
    %c0_i32 = arith.constant 0 : i32
    %2 = arith.minsi %1, %c0_i32 : i32
    %c0_i32_0 = arith.constant 0 : i32
    return %arg1, %2 : i32, i32
  }
  func.func @transform_2(%arg0: i32, %arg1: i32, %arg2: i32) -> (i32, i32, i32) {
    %c1_i32 = arith.constant 1 : i32
    %0 = arith.muli %arg0, %c1_i32 : i32
    %1 = arith.addi %0, %arg1 : i32
    %c0_i32 = arith.constant 0 : i32
    %c0_i32_0 = arith.constant 0 : i32
    %c0_i32_1 = arith.constant 0 : i32
    return %1, %c0_i32, %c0_i32_0 : i32, i32, i32
  }
  func.func @transform_3(%arg0: i32, %arg1: i32, %arg2: i32) -> (i32, i32, i32) {
    %c1_i32 = arith.constant 1 : i32
    %0 = arith.muli %arg0, %c1_i32 : i32
    %1 = arith.addi %0, %arg1 : i32
    %c0_i32 = arith.constant 0 : i32
    %c0_i32_0 = arith.constant 0 : i32
    %c0_i32_1 = arith.constant 0 : i32
    return %1, %c0_i32, %c0_i32_0 : i32, i32, i32
  }
}

</mosaic_0001>

<bundles_post_ra>
// kernel: tpu_custom_call.1
= control target key start
LH: loop header
LB: loop body
LE: loop exit
PB: predicated region body
PF: predicated region fallthrough
CT: control target
= control target key end

     0   :  { %9 = vsyncpa [#allocation5], 0  ;;  %s271_s0 = inlined_call_operand.hbm [shape: f32[8,256], index: 0, kind: input, shape index: {}]   ;;  %s272_s1 = inlined_call_operand.hbm [shape: f32[8,256], index: 1, kind: input, shape index: {}]   ;;  %s273_s2 = inlined_call_operand.vmem [shape: f32[1,8,1], index: 2, kind: output, shape index: {0}]   ;;  %s274_s3 = inlined_call_operand.vmem [shape: f32[1,8,1], index: 3, kind: output, shape index: {1}]  }
   0x1   :  { %10 = vsyncpa [#allocation7], 0  ;;  %s219_s12 = smov [#allocation4]   ;;  %s220_s14 = smov [#allocation6]  }
   0x2   :  { %s23_s13 = sshll.u32 %s219_s12, 4  ;;  %s39_s15 = sshll.u32 %s220_s14, 4  ;;  %s24_s13 = int_to_ptr.vmem [resolvable:$true] %s23_s13  ;;  %s40_s15 = int_to_ptr.vmem [resolvable:$true] %s39_s15 }
   0x3   :  { %s171_s18 = scalar_lea.hbm %s271_s0, 256 }
   0x4   :  { %p172_p0 = scmp.ne.s32.totalorder %s271_s0, %s171_s18  ;;  %p175_p1 = scmp.lt.u32.totalorder %s171_s18, %s271_s0 }
   0x6   :  { %p177_p2 = pnand %p175_p1, %p172_p0 }
   0x8   :  { %180 = shalt.err (!%p177_p2)
}
   0x9   :  { %s181_s23 = scalar_lea.vmem %s24_s13, 256  ;;  %p186_p4 = scmp.lt.s32.totalorder %s24_s13, %s24_s13 }
   0xa   :  { %p182_p3 = scmp.ne.s32.totalorder %s24_s13, %s181_s23  ;;  %p187_p5 = scmp.lt.s32.totalorder %s181_s23, %s181_s23 }
   0xc   :  { %p188_p6 = por %p187_p5, %p186_p4 }
   0xe   :  { %p189_p7 = pnand %p188_p6, %p182_p3 }
  0x10   :  { %192 = shalt.err (!%p189_p7)
}
  0x11   :  { %26 = dma.hbm_to_vmem [thread:$0]  %s271_s0, 256, %s24_s13, [#allocation5]  }
  0x12   :  { %s193_s28 = scalar_lea.hbm %s272_s1, 256 }
  0x13   :  { %p194_p8 = scmp.ne.s32.totalorder %s272_s1, %s193_s28  ;;  %p197_p9 = scmp.lt.u32.totalorder %s193_s28, %s272_s1 }
  0x15   :  { %p199_p10 = pnand %p197_p9, %p194_p8 }
  0x17   :  { %202 = shalt.err (!%p199_p10)
}
  0x18   :  { %s203_s6 = scalar_lea.vmem %s40_s15, 256  ;;  %p208_p12 = scmp.lt.s32.totalorder %s40_s15, %s40_s15 }
  0x19   :  { %p204_p11 = scmp.ne.s32.totalorder %s40_s15, %s203_s6  ;;  %p209_p13 = scmp.lt.s32.totalorder %s203_s6, %s203_s6 }
  0x1b   :  { %p210_p0 = por %p209_p13, %p208_p12 }
  0x1d   :  { %p211_p1 = pnand %p210_p0, %p204_p11 }
  0x1f   :  { %214 = shalt.err (!%p211_p1)
}
  0x20   :  { %42 = dma.hbm_to_vmem [thread:$0]  %s272_s1, 256, %s40_s15, [#allocation7]  }
  0x21   :  { %215 = dma.done.wait [#allocation5], 256  }
  0x22   :  { %216 = vsyncadd [#allocation5], 4294967040 }
  0x23   :  { %217 = dma.done.wait [#allocation7], 256  }
  0x24   :  { %218 = vsyncadd [#allocation7], 4294967040  ;;  %v85_v0 = vld [vmem:[#allocation4] sm:$0xff]  ;;  %v86_v1 = vld [vmem:[#allocation6] sm:$0xff]  ;;  %vm111_vm0 = vcmask 7168  }
  0x25   :  { %v92_v2 = vld [vmem:[#allocation4 + $0x8] sm:$0xff]  ;;  %v87_v3 = vmul.f32 %v86_v1, %v85_v0  ;;  %v89_v4 = vmul.f32 %v85_v0, %v85_v0  ;;  %v93_v5 = vld [vmem:[#allocation6 + $0x8] sm:$0xff] }
  0x26   :  { %v96_v6 = vmul.f32 %v92_v2, %v92_v2  ;;  %v94_v7 = vmul.f32 %v93_v5, %v92_v2 }
  0x27   :  { %v90_v8 = vadd.f32 %v89_v4, %v86_v1 }
  0x28   :  { %v97_v9 = vadd.f32 %v96_v6, %v93_v5  ;;  %v95_v10 = vadd.f32 %v94_v7, %v87_v3 }
  0x2a   :  { %109 = vadd.xlane.f32.xlu0 %v95_v10  ;;  %v98_v11 = vadd.f32 %v97_v9, %v90_v8 }
  0x2e   :  { %114 = vadd.xlane.f32.xlu0 %v98_v11 }
  0xb7   :  { %v110_v12 = vpop.xlane.xlu0 %109 }
  0xb8   :  { %112 = vst.msk [vmem:[%s273_s2] sm:$0xff] %vm111_vm0, %v110_v12 }
  0xbb   :  { %v115_v13 = vpop.xlane.xlu0 %114 }
  0xbc   :  { %116 = vst.msk [vmem:[%s274_s3] sm:$0xff] %vm111_vm0, %v115_v13 }
  0xbd   :  { %147 = vsyncpa [#allocation5], 1 }
  0xbe   :  { %148 = vsyncpa [#allocation7], 1 }

</bundles_post_ra>
